<compile_context>
chip_gen: v5e
topology: v5e:2x2
jax: 0.10.0
libtpu: 0.0.40
codegen_flags: <defaults>
</compile_context>

<pallas_src>
import functools

import jax
import jax.numpy as jnp
from jax.experimental import pallas as pl
from jax.experimental.pallas import tpu as pltpu

INPUT_DIM = 5
HIDDEN_DIM = 64
NUM_LAYERS = 5
OUTPUT_DIM = 1
FEAT_PAD = 8          # sublane-aligned feature rows: 5 real + 1 constant(bias) + 2 zero
LANE_ALIGN = 256      # tile_m granularity; each of the 2 half-tiles stays lane-aligned


def _round_up(a, m):
    return (a + m - 1) // m * m


def _default_epilogue_dtype():
    # v5e has no bf16 VALU path -> keep the elementwise epilogue in f32 there.
    # v6e / v7x process packed bf16 on the VPU -> bf16 epilogue halves its cost.
    try:
        kind = jax.devices()[0].device_kind.lower()
    except Exception:
        kind = ""
    return jnp.float32 if "v5" in kind else jnp.bfloat16


def crime_nn_kernel(x_ref, w0_ref, wh_ref, wo_ref, b_ref, o_ref, *,
                    ep_dtype, half):
    """Feature-major MLP forward for one batch tile.

    x_ref : (FEAT_PAD, tile_m)             bf16  input tile; row INPUT_DIM == 1.0
    w0_ref: (HIDDEN_DIM, FEAT_PAD)         bf16  layer-0 weight, bias folded in col 5
    wh_ref: (NUM_LAYERS-1, HIDDEN, HIDDEN) bf16  hidden-layer weights, packed
    wo_ref: (OUTPUT_DIM, HIDDEN_DIM)       bf16  output-layer weight
    b_ref : (HIDDEN_DIM, NUM_LAYERS)       f32   cols 0..3 = hidden biases,
                                                 [0, NUM_LAYERS-1] = output bias
    o_ref : (1, tile_m)                    f32   sigmoid output (lane-dense)
    """
    w0 = w0_ref[...]
    wo = wo_ref[...]
    b_f32 = b_ref[...]
    b_hid = b_f32[:, :NUM_LAYERS - 1].astype(ep_dtype)            # (H, 4)
    b_out = b_f32[0:1, NUM_LAYERS - 1:NUM_LAYERS]                 # (1, 1) f32

    # Two independent half-tiles: the two 6-matmul dependency chains interleave,
    # letting MXU pushes of one half hide the VPU/EUP epilogue of the other.
    xs = [x_ref[:, pl.ds(c * half, half)] for c in range(2)]

    # Layer 0: Linear(5,64)+ReLU; bias comes from the constant-1 feature row
    # folded into w0, so it accumulates on the MXU in f32 for free.
    hs = [jnp.dot(w0, xc, preferred_element_type=jnp.float32) for xc in xs]
    hs = [jnp.maximum(h.astype(ep_dtype), 0).astype(jnp.bfloat16) for h in hs]

    # Hidden layers 1..NUM_LAYERS-1: Linear(64,64)+ReLU.
    for l in range(NUM_LAYERS - 1):
        bl = b_hid[:, l:l + 1]
        zs = [jnp.dot(wh_ref[l], h, preferred_element_type=jnp.float32)
              for h in hs]
        hs = [jnp.maximum(z.astype(ep_dtype) + bl, 0).astype(jnp.bfloat16)
              for z in zs]

    # Output layer: Linear(64,1)+Sigmoid, stored lane-dense as (1, tile_m).
    for c in range(2):
        y = jnp.dot(wo, hs[c], preferred_element_type=jnp.float32)   # (1, half)
        o_ref[:, pl.ds(c * half, half)] = jax.nn.sigmoid(y + b_out)


def crime_nn_forward(x, params, *, tile_m=8192, epilogue_dtype=None):
    """x: [N, INPUT_DIM] f32.  params: list of (W, b), torch layout W=[out,in], b=[out]."""
    n, d = x.shape
    assert d == INPUT_DIM
    assert len(params) == NUM_LAYERS + 1
    if epilogue_dtype is None:
        epilogue_dtype = _default_epilogue_dtype()

    # --- batch tiling --------------------------------------------------------
    n_aligned = _round_up(max(n, 1), LANE_ALIGN)
    tile_m = max(LANE_ALIGN, _round_up(min(tile_m, n_aligned), LANE_ALIGN))
    if n_aligned >= 2 * LANE_ALIGN:
        # Keep >= 2 grid steps so v7x can shard the parallel axis over both TCs.
        tile_m = min(tile_m,
                     max(LANE_ALIGN, (n_aligned // 2) // LANE_ALIGN * LANE_ALIGN))
    n_pad = _round_up(n, tile_m)
    grid = (n_pad // tile_m,)

    # --- operand packing -----------------------------------------------------
    # Feature-major, zero-padded, bf16 input; row INPUT_DIM is constant 1.0 so
    # the layer-0 bias (extra column of w0) is applied by the MXU.
    xt = jnp.concatenate(
        [x.astype(jnp.float32).T,
         jnp.ones((1, n), jnp.float32),
         jnp.zeros((FEAT_PAD - INPUT_DIM - 1, n), jnp.float32)], axis=0)
    xt = jnp.pad(xt, ((0, 0), (0, n_pad - n))).astype(jnp.bfloat16)

    w0 = jnp.zeros((HIDDEN_DIM, FEAT_PAD), jnp.float32)
    w0 = w0.at[:, :INPUT_DIM].set(params[0][0].astype(jnp.float32))
    w0 = w0.at[:, INPUT_DIM].set(params[0][1].astype(jnp.float32))
    w0 = w0.astype(jnp.bfloat16)

    wh = jnp.stack([params[l][0] for l in range(1, NUM_LAYERS)],
                   axis=0).astype(jnp.bfloat16)                        # (4, H, H)
    wo = params[NUM_LAYERS][0].astype(jnp.bfloat16)                    # (1, H)

    bias = jnp.zeros((HIDDEN_DIM, NUM_LAYERS), jnp.float32)
    for l in range(1, NUM_LAYERS):
        bias = bias.at[:, l - 1].set(params[l][1].astype(jnp.float32))
    bias = bias.at[0, NUM_LAYERS - 1].set(
        params[NUM_LAYERS][1].astype(jnp.float32)[0])

    in_specs = [
        pl.BlockSpec((FEAT_PAD, tile_m), lambda i: (0, i)),            # streamed x tile
        pl.BlockSpec(w0.shape, lambda i: (0, 0)),                      # resident
        pl.BlockSpec(wh.shape, lambda i: (0, 0, 0)),                   # resident
        pl.BlockSpec(wo.shape, lambda i: (0, 0)),                      # resident
        pl.BlockSpec(bias.shape, lambda i: (0, 0)),                    # resident
    ]
    out_spec = pl.BlockSpec((1, tile_m), lambda i: (0, i))             # lane-dense

    flops = 2 * n_pad * (FEAT_PAD * HIDDEN_DIM
                         + (NUM_LAYERS - 1) * HIDDEN_DIM * HIDDEN_DIM
                         + HIDDEN_DIM * OUTPUT_DIM)
    bytes_accessed = (xt.size * 2 + n_pad * OUTPUT_DIM * 4
                      + (w0.size + wh.size + wo.size) * 2 + bias.size * 4)

    kernel = functools.partial(crime_nn_kernel,
                               ep_dtype=epilogue_dtype,
                               half=tile_m // 2)

    out = pl.pallas_call(
        kernel,
        out_shape=jax.ShapeDtypeStruct((1, n_pad), jnp.float32),
        grid_spec=pltpu.PrefetchScalarGridSpec(
            num_scalar_prefetch=0,
            grid=grid,
            in_specs=in_specs,
            out_specs=out_spec,
        ),
        compiler_params=pltpu.CompilerParams(
            dimension_semantics=("parallel",),
            vmem_limit_bytes=32 * 1024 * 1024,
        ),
        cost_estimate=pl.CostEstimate(
            flops=flops,
            transcendentals=n_pad,             # one sigmoid per padded row
            bytes_accessed=bytes_accessed,
        ),
    )(xt, w0, wh, wo, bias)

    return out[0, :n].reshape(n, OUTPUT_DIM)


def init_params(key):
    """Torch-layout init mimicking nn.Linear default (uniform +-1/sqrt(fan_in))."""
    dims = [INPUT_DIM] + [HIDDEN_DIM] * NUM_LAYERS + [OUTPUT_DIM]
    params = []
    for i in range(len(dims) - 1):
        fan_in, fan_out = dims[i], dims[i + 1]
        key, kw, kb = jax.random.split(key, 3)
        bound = 1.0 / jnp.sqrt(jnp.float32(fan_in))
        w = jax.random.uniform(kw, (fan_out, fan_in), jnp.float32, -bound, bound)
        b = jax.random.uniform(kb, (fan_out,), jnp.float32, -bound, bound)
        params.append((w, b))
    return params


def reference_forward(x, params, matmul_dtype=jnp.float32,
                      epilogue_dtype=jnp.float32):
    """Pure-JAX reference.  matmul/epilogue dtypes mirror the kernel's precision."""
    h = x.astype(jnp.float32)
    n_layers = len(params)
    for i, (w, b) in enumerate(params):
        z = jnp.dot(h.astype(matmul_dtype), w.astype(matmul_dtype).T,
                    preferred_element_type=jnp.float32)
        if i < n_layers - 1:
            z = z.astype(epilogue_dtype) + b.astype(epilogue_dtype)[None, :]
            h = jnp.maximum(z, 0).astype(jnp.float32)
        else:
            h = jax.nn.sigmoid(z + b.astype(jnp.float32)[None, :])
    return h


if __name__ == "__main__":
    key = jax.random.PRNGKey(0)
    key, kx, kx2 = jax.random.split(key, 3)
    params = init_params(key)
    ep_dtype = _default_epilogue_dtype()

    # Small example batch (wrapper pads to a full lane-aligned tile).
    batch = 16
    x = jax.random.normal(kx, (batch, INPUT_DIM), jnp.float32)
    out = jax.block_until_ready(crime_nn_forward(x, params, epilogue_dtype=ep_dtype))
    assert out.shape == (batch, OUTPUT_DIM)

    ref_matched = reference_forward(x, params, matmul_dtype=jnp.bfloat16,
                                    epilogue_dtype=ep_dtype)
    ref_f32 = reference_forward(x, params)
    assert jnp.allclose(out, ref_matched, atol=1e-2), \
        float(jnp.max(jnp.abs(out - ref_matched)))
    assert jnp.allclose(out, ref_f32, atol=5e-2), \
        float(jnp.max(jnp.abs(out - ref_f32)))

    # Second shape exercising a multi-step grid (>=2 steps) plus batch padding.
    batch2 = 600
    x2 = jax.random.normal(kx2, (batch2, INPUT_DIM), jnp.float32)
    out2 = jax.block_until_ready(crime_nn_forward(x2, params, epilogue_dtype=ep_dtype))
    assert out2.shape == (batch2, OUTPUT_DIM)
    ref2 = reference_forward(x2, params, matmul_dtype=jnp.bfloat16,
                             epilogue_dtype=ep_dtype)
    assert jnp.allclose(out2, ref2, atol=1e-2), \
        float(jnp.max(jnp.abs(out2 - ref2)))

    print("KERNEL_OK")
</pallas_src>

<mosaic_0001>
module attributes {stable_mosaic.version = 11 : i64} {
  func.func @crime_nn_kernel(%arg0: i32, %arg1: memref<8x256xbf16, #tpu.memory_space<vmem>>, %arg2: memref<64x8xbf16, #tpu.memory_space<vmem>>, %arg3: memref<4x64x64xbf16, #tpu.memory_space<vmem>>, %arg4: memref<1x64xbf16, #tpu.memory_space<vmem>>, %arg5: memref<64x5xf32, #tpu.memory_space<vmem>>, %arg6: memref<1x256xf32, #tpu.memory_space<vmem>>) attributes {dimension_semantics = [#tpu.dimension_semantics<parallel>], iteration_bounds = array<i64: 1>, scalar_prefetch = 0 : i64, scratch_operands = 0 : i64, tpu.core_type = #tpu.core_type<tc>, window_params = [{transform_indices = @transform_0, window_bounds = array<i64: 8, 256>}, {pipeline_mode = #tpu.pipeline_mode<synchronous>, transform_indices = @transform_1, window_bounds = array<i64: 64, 8>}, {pipeline_mode = #tpu.pipeline_mode<synchronous>, transform_indices = @transform_2, window_bounds = array<i64: 4, 64, 64>}, {pipeline_mode = #tpu.pipeline_mode<synchronous>, transform_indices = @transform_3, window_bounds = array<i64: 1, 64>}, {pipeline_mode = #tpu.pipeline_mode<synchronous>, transform_indices = @transform_4, window_bounds = array<i64: 64, 5>}, {transform_indices = @transform_5, window_bounds = array<i64: 1, 256>}]} {
    %c0 = arith.constant 0 : index
    %c0_0 = arith.constant 0 : index
    %0 = vector.load %arg2[%c0, %c0_0] : memref<64x8xbf16, #tpu.memory_space<vmem>>, vector<64x8xbf16>
    %c0_1 = arith.constant 0 : index
    %c0_2 = arith.constant 0 : index
    %1 = vector.load %arg4[%c0_1, %c0_2] : memref<1x64xbf16, #tpu.memory_space<vmem>>, vector<1x64xbf16>
    %c0_3 = arith.constant 0 : index
    %c0_4 = arith.constant 0 : index
    %2 = vector.load %arg5[%c0_3, %c0_4] : memref<64x5xf32, #tpu.memory_space<vmem>>, vector<64x5xf32>
    %3 = vector.extract_strided_slice %2 {offsets = [0, 0], sizes = [64, 4], strides = [1, 1]} : vector<64x5xf32> to vector<64x4xf32>
    %4 = arith.truncf %3 : vector<64x4xf32> to vector<64x4xbf16>
    %5 = vector.extract_strided_slice %2 {offsets = [0, 4], sizes = [1, 1], strides = [1, 1]} : vector<64x5xf32> to vector<1x1xf32>
    %c0_5 = arith.constant 0 : index
    %c0_6 = arith.constant 0 : index
    %6 = vector.load %arg1[%c0_5, %c0_6] : memref<8x256xbf16, #tpu.memory_space<vmem>>, vector<8x128xbf16>
    %c0_7 = arith.constant 0 : index
    %c128 = arith.constant 128 : index
    %7 = vector.load %arg1[%c0_7, %c128] : memref<8x256xbf16, #tpu.memory_space<vmem>>, vector<8x128xbf16>
    %cst = arith.constant dense<0.000000e+00> : vector<64x128xf32>
    %8 = tpu.matmul %0, %6, %cst {dimension_numbers = #tpu.dot_dimension_numbers<[1], [0], [0], [1], [0, 0, 1, 1], [], []>} : vector<64x8xbf16>, vector<8x128xbf16>, vector<64x128xf32> -> vector<64x128xf32>
    %cst_8 = arith.constant dense<0.000000e+00> : vector<64x128xf32>
    %9 = tpu.matmul %0, %7, %cst_8 {dimension_numbers = #tpu.dot_dimension_numbers<[1], [0], [0], [1], [0, 0, 1, 1], [], []>} : vector<64x8xbf16>, vector<8x128xbf16>, vector<64x128xf32> -> vector<64x128xf32>
    %10 = arith.truncf %8 : vector<64x128xf32> to vector<64x128xbf16>
    %cst_9 = arith.constant 0.000000e+00 : bf16
    %11 = vector.broadcast %cst_9 : bf16 to vector<64x128xbf16>
    %12 = arith.maximumf %10, %11 : vector<64x128xbf16>
    %13 = arith.truncf %9 : vector<64x128xf32> to vector<64x128xbf16>
    %cst_10 = arith.constant 0.000000e+00 : bf16
    %14 = vector.broadcast %cst_10 : bf16 to vector<64x128xbf16>
    %15 = arith.maximumf %13, %14 : vector<64x128xbf16>
    %16 = vector.extract_strided_slice %4 {offsets = [0, 0], sizes = [64, 1], strides = [1, 1]} : vector<64x4xbf16> to vector<64x1xbf16>
    %c0_11 = arith.constant 0 : index
    %c0_12 = arith.constant 0 : index
    %c0_13 = arith.constant 0 : index
    %17 = vector.load %arg3[%c0_11, %c0_12, %c0_13] : memref<4x64x64xbf16, #tpu.memory_space<vmem>>, vector<1x64x64xbf16>
    %18 = vector.shape_cast %17 : vector<1x64x64xbf16> to vector<64x64xbf16>
    %cst_14 = arith.constant dense<0.000000e+00> : vector<64x128xf32>
    %19 = tpu.matmul %18, %12, %cst_14 {dimension_numbers = #tpu.dot_dimension_numbers<[1], [0], [0], [1], [0, 0, 1, 1], [], []>} : vector<64x64xbf16>, vector<64x128xbf16>, vector<64x128xf32> -> vector<64x128xf32>
    %c0_15 = arith.constant 0 : index
    %c0_16 = arith.constant 0 : index
    %c0_17 = arith.constant 0 : index
    %20 = vector.load %arg3[%c0_15, %c0_16, %c0_17] : memref<4x64x64xbf16, #tpu.memory_space<vmem>>, vector<1x64x64xbf16>
    %21 = vector.shape_cast %20 : vector<1x64x64xbf16> to vector<64x64xbf16>
    %cst_18 = arith.constant dense<0.000000e+00> : vector<64x128xf32>
    %22 = tpu.matmul %21, %15, %cst_18 {dimension_numbers = #tpu.dot_dimension_numbers<[1], [0], [0], [1], [0, 0, 1, 1], [], []>} : vector<64x64xbf16>, vector<64x128xbf16>, vector<64x128xf32> -> vector<64x128xf32>
    %23 = arith.truncf %19 : vector<64x128xf32> to vector<64x128xbf16>
    %24 = vector.broadcast %16 : vector<64x1xbf16> to vector<64x128xbf16>
    %25 = arith.addf %23, %24 : vector<64x128xbf16>
    %cst_19 = arith.constant 0.000000e+00 : bf16
    %26 = vector.broadcast %cst_19 : bf16 to vector<64x128xbf16>
    %27 = arith.maximumf %25, %26 : vector<64x128xbf16>
    %28 = arith.truncf %22 : vector<64x128xf32> to vector<64x128xbf16>
    %29 = vector.broadcast %16 : vector<64x1xbf16> to vector<64x128xbf16>
    %30 = arith.addf %28, %29 : vector<64x128xbf16>
    %cst_20 = arith.constant 0.000000e+00 : bf16
    %31 = vector.broadcast %cst_20 : bf16 to vector<64x128xbf16>
    %32 = arith.maximumf %30, %31 : vector<64x128xbf16>
    %33 = vector.extract_strided_slice %4 {offsets = [0, 1], sizes = [64, 1], strides = [1, 1]} : vector<64x4xbf16> to vector<64x1xbf16>
    %c1 = arith.constant 1 : index
    %c0_21 = arith.constant 0 : index
    %c0_22 = arith.constant 0 : index
    %34 = vector.load %arg3[%c1, %c0_21, %c0_22] : memref<4x64x64xbf16, #tpu.memory_space<vmem>>, vector<1x64x64xbf16>
    %35 = vector.shape_cast %34 : vector<1x64x64xbf16> to vector<64x64xbf16>
    %cst_23 = arith.constant dense<0.000000e+00> : vector<64x128xf32>
    %36 = tpu.matmul %35, %27, %cst_23 {dimension_numbers = #tpu.dot_dimension_numbers<[1], [0], [0], [1], [0, 0, 1, 1], [], []>} : vector<64x64xbf16>, vector<64x128xbf16>, vector<64x128xf32> -> vector<64x128xf32>
    %c1_24 = arith.constant 1 : index
    %c0_25 = arith.constant 0 : index
    %c0_26 = arith.constant 0 : index
    %37 = vector.load %arg3[%c1_24, %c0_25, %c0_26] : memref<4x64x64xbf16, #tpu.memory_space<vmem>>, vector<1x64x64xbf16>
    %38 = vector.shape_cast %37 : vector<1x64x64xbf16> to vector<64x64xbf16>
    %cst_27 = arith.constant dense<0.000000e+00> : vector<64x128xf32>
    %39 = tpu.matmul %38, %32, %cst_27 {dimension_numbers = #tpu.dot_dimension_numbers<[1], [0], [0], [1], [0, 0, 1, 1], [], []>} : vector<64x64xbf16>, vector<64x128xbf16>, vector<64x128xf32> -> vector<64x128xf32>
    %40 = arith.truncf %36 : vector<64x128xf32> to vector<64x128xbf16>
    %41 = vector.broadcast %33 : vector<64x1xbf16> to vector<64x128xbf16>
    %42 = arith.addf %40, %41 : vector<64x128xbf16>
    %cst_28 = arith.constant 0.000000e+00 : bf16
    %43 = vector.broadcast %cst_28 : bf16 to vector<64x128xbf16>
    %44 = arith.maximumf %42, %43 : vector<64x128xbf16>
    %45 = arith.truncf %39 : vector<64x128xf32> to vector<64x128xbf16>
    %46 = vector.broadcast %33 : vector<64x1xbf16> to vector<64x128xbf16>
    %47 = arith.addf %45, %46 : vector<64x128xbf16>
    %cst_29 = arith.constant 0.000000e+00 : bf16
    %48 = vector.broadcast %cst_29 : bf16 to vector<64x128xbf16>
    %49 = arith.maximumf %47, %48 : vector<64x128xbf16>
    %50 = vector.extract_strided_slice %4 {offsets = [0, 2], sizes = [64, 1], strides = [1, 1]} : vector<64x4xbf16> to vector<64x1xbf16>
    %c2 = arith.constant 2 : index
    %c0_30 = arith.constant 0 : index
    %c0_31 = arith.constant 0 : index
    %51 = vector.load %arg3[%c2, %c0_30, %c0_31] : memref<4x64x64xbf16, #tpu.memory_space<vmem>>, vector<1x64x64xbf16>
    %52 = vector.shape_cast %51 : vector<1x64x64xbf16> to vector<64x64xbf16>
    %cst_32 = arith.constant dense<0.000000e+00> : vector<64x128xf32>
    %53 = tpu.matmul %52, %44, %cst_32 {dimension_numbers = #tpu.dot_dimension_numbers<[1], [0], [0], [1], [0, 0, 1, 1], [], []>} : vector<64x64xbf16>, vector<64x128xbf16>, vector<64x128xf32> -> vector<64x128xf32>
    %c2_33 = arith.constant 2 : index
    %c0_34 = arith.constant 0 : index
    %c0_35 = arith.constant 0 : index
    %54 = vector.load %arg3[%c2_33, %c0_34, %c0_35] : memref<4x64x64xbf16, #tpu.memory_space<vmem>>, vector<1x64x64xbf16>
    %55 = vector.shape_cast %54 : vector<1x64x64xbf16> to vector<64x64xbf16>
    %cst_36 = arith.constant dense<0.000000e+00> : vector<64x128xf32>
    %56 = tpu.matmul %55, %49, %cst_36 {dimension_numbers = #tpu.dot_dimension_numbers<[1], [0], [0], [1], [0, 0, 1, 1], [], []>} : vector<64x64xbf16>, vector<64x128xbf16>, vector<64x128xf32> -> vector<64x128xf32>
    %57 = arith.truncf %53 : vector<64x128xf32> to vector<64x128xbf16>
    %58 = vector.broadcast %50 : vector<64x1xbf16> to vector<64x128xbf16>
    %59 = arith.addf %57, %58 : vector<64x128xbf16>
    %cst_37 = arith.constant 0.000000e+00 : bf16
    %60 = vector.broadcast %cst_37 : bf16 to vector<64x128xbf16>
    %61 = arith.maximumf %59, %60 : vector<64x128xbf16>
    %62 = arith.truncf %56 : vector<64x128xf32> to vector<64x128xbf16>
    %63 = vector.broadcast %50 : vector<64x1xbf16> to vector<64x128xbf16>
    %64 = arith.addf %62, %63 : vector<64x128xbf16>
    %cst_38 = arith.constant 0.000000e+00 : bf16
    %65 = vector.broadcast %cst_38 : bf16 to vector<64x128xbf16>
    %66 = arith.maximumf %64, %65 : vector<64x128xbf16>
    %67 = vector.extract_strided_slice %4 {offsets = [0, 3], sizes = [64, 1], strides = [1, 1]} : vector<64x4xbf16> to vector<64x1xbf16>
    %c3 = arith.constant 3 : index
    %c0_39 = arith.constant 0 : index
    %c0_40 = arith.constant 0 : index
    %68 = vector.load %arg3[%c3, %c0_39, %c0_40] : memref<4x64x64xbf16, #tpu.memory_space<vmem>>, vector<1x64x64xbf16>
    %69 = vector.shape_cast %68 : vector<1x64x64xbf16> to vector<64x64xbf16>
    %cst_41 = arith.constant dense<0.000000e+00> : vector<64x128xf32>
    %70 = tpu.matmul %69, %61, %cst_41 {dimension_numbers = #tpu.dot_dimension_numbers<[1], [0], [0], [1], [0, 0, 1, 1], [], []>} : vector<64x64xbf16>, vector<64x128xbf16>, vector<64x128xf32> -> vector<64x128xf32>
    %c3_42 = arith.constant 3 : index
    %c0_43 = arith.constant 0 : index
    %c0_44 = arith.constant 0 : index
    %71 = vector.load %arg3[%c3_42, %c0_43, %c0_44] : memref<4x64x64xbf16, #tpu.memory_space<vmem>>, vector<1x64x64xbf16>
    %72 = vector.shape_cast %71 : vector<1x64x64xbf16> to vector<64x64xbf16>
    %cst_45 = arith.constant dense<0.000000e+00> : vector<64x128xf32>
    %73 = tpu.matmul %72, %66, %cst_45 {dimension_numbers = #tpu.dot_dimension_numbers<[1], [0], [0], [1], [0, 0, 1, 1], [], []>} : vector<64x64xbf16>, vector<64x128xbf16>, vector<64x128xf32> -> vector<64x128xf32>
    %74 = arith.truncf %70 : vector<64x128xf32> to vector<64x128xbf16>
    %75 = vector.broadcast %67 : vector<64x1xbf16> to vector<64x128xbf16>
    %76 = arith.addf %74, %75 : vector<64x128xbf16>
    %cst_46 = arith.constant 0.000000e+00 : bf16
    %77 = vector.broadcast %cst_46 : bf16 to vector<64x128xbf16>
    %78 = arith.maximumf %76, %77 : vector<64x128xbf16>
    %79 = arith.truncf %73 : vector<64x128xf32> to vector<64x128xbf16>
    %80 = vector.broadcast %67 : vector<64x1xbf16> to vector<64x128xbf16>
    %81 = arith.addf %79, %80 : vector<64x128xbf16>
    %cst_47 = arith.constant 0.000000e+00 : bf16
    %82 = vector.broadcast %cst_47 : bf16 to vector<64x128xbf16>
    %83 = arith.maximumf %81, %82 : vector<64x128xbf16>
    %cst_48 = arith.constant dense<0.000000e+00> : vector<1x128xf32>
    %84 = tpu.matmul %1, %78, %cst_48 {dimension_numbers = #tpu.dot_dimension_numbers<[1], [0], [0], [1], [0, 0, 1, 1], [], []>} : vector<1x64xbf16>, vector<64x128xbf16>, vector<1x128xf32> -> vector<1x128xf32>
    %85 = vector.broadcast %5 : vector<1x1xf32> to vector<1x128xf32>
    %86 = arith.addf %84, %85 : vector<1x128xf32>
    %87 = arith.negf %86 : vector<1x128xf32>
    %88 = math.exp %87 : vector<1x128xf32>
    %cst_49 = arith.constant 1.000000e+00 : f32
    %89 = vector.broadcast %cst_49 : f32 to vector<1x128xf32>
    %90 = arith.addf %89, %88 : vector<1x128xf32>
    %91 = arith.divf %89, %90 : vector<1x128xf32>
    %c0_50 = arith.constant 0 : index
    %c0_51 = arith.constant 0 : index
    %92 = vector.load %arg6[%c0_50, %c0_51] : memref<1x256xf32, #tpu.memory_space<vmem>>, vector<1x128xf32>
    tpu.vector_store %arg6[%c0_50, %c0_51], %91 {strides = array<i32>} : memref<1x256xf32, #tpu.memory_space<vmem>>, vector<1x128xf32>,
    %cst_52 = arith.constant dense<0.000000e+00> : vector<1x128xf32>
    %93 = tpu.matmul %1, %83, %cst_52 {dimension_numbers = #tpu.dot_dimension_numbers<[1], [0], [0], [1], [0, 0, 1, 1], [], []>} : vector<1x64xbf16>, vector<64x128xbf16>, vector<1x128xf32> -> vector<1x128xf32>
    %94 = vector.broadcast %5 : vector<1x1xf32> to vector<1x128xf32>
    %95 = arith.addf %93, %94 : vector<1x128xf32>
    %96 = arith.negf %95 : vector<1x128xf32>
    %97 = math.exp %96 : vector<1x128xf32>
    %cst_53 = arith.constant 1.000000e+00 : f32
    %98 = vector.broadcast %cst_53 : f32 to vector<1x128xf32>
    %99 = arith.addf %98, %97 : vector<1x128xf32>
    %100 = arith.divf %98, %99 : vector<1x128xf32>
    %c0_54 = arith.constant 0 : index
    %c128_55 = arith.constant 128 : index
    %101 = vector.load %arg6[%c0_54, %c128_55] : memref<1x256xf32, #tpu.memory_space<vmem>>, vector<1x128xf32>
    tpu.vector_store %arg6[%c0_54, %c128_55], %100 {strides = array<i32>} : memref<1x256xf32, #tpu.memory_space<vmem>>, vector<1x128xf32>,
    return
  }
  func.func @transform_0(%arg0: i32) -> (i32, i32) {
    %c0_i32 = arith.constant 0 : i32
    %c0_i32_0 = arith.constant 0 : i32
    return %c0_i32, %arg0 : i32, i32
  }
  func.func @transform_1(%arg0: i32) -> (i32, i32) {
    %c0_i32 = arith.constant 0 : i32
    %c0_i32_0 = arith.constant 0 : i32
    %c0_i32_1 = arith.constant 0 : i32
    return %c0_i32, %c0_i32_0 : i32, i32
  }
  func.func @transform_2(%arg0: i32) -> (i32, i32, i32) {
    %c0_i32 = arith.constant 0 : i32
    %c0_i32_0 = arith.constant 0 : i32
    %c0_i32_1 = arith.constant 0 : i32
    %c0_i32_2 = arith.constant 0 : i32
    return %c0_i32, %c0_i32_0, %c0_i32_1 : i32, i32, i32
  }
  func.func @transform_3(%arg0: i32) -> (i32, i32) {
    %c0_i32 = arith.constant 0 : i32
    %c0_i32_0 = arith.constant 0 : i32
    %c0_i32_1 = arith.constant 0 : i32
    return %c0_i32, %c0_i32_0 : i32, i32
  }
  func.func @transform_4(%arg0: i32) -> (i32, i32) {
    %c0_i32 = arith.constant 0 : i32
    %c0_i32_0 = arith.constant 0 : i32
    %c0_i32_1 = arith.constant 0 : i32
    return %c0_i32, %c0_i32_0 : i32, i32
  }
  func.func @transform_5(%arg0: i32) -> (i32, i32) {
    %c0_i32 = arith.constant 0 : i32
    %c0_i32_0 = arith.constant 0 : i32
    return %c0_i32, %arg0 : i32, i32
  }
}

</mosaic_0001>

<bundles_post_ra>
// kernel: tpu_custom_call.1
= control target key start
LH: loop header
LB: loop body
LE: loop exit
PB: predicated region body
PF: predicated region fallthrough
CT: control target
= control target key end

     0   :  { %10 = vsyncpa [#allocation3], 0  ;;  %s2035_s0 = inlined_call_operand.vmem [shape: bf16[8,256], index: 0, kind: input, shape index: {}]   ;;  %s2036_s1 = inlined_call_operand.vmem [shape: bf16[64,8], index: 1, kind: input, shape index: {}]   ;;  %s2037_s2 = inlined_call_operand.hbm [shape: bf16[4,64,64], index: 2, kind: input, shape index: {}]   ;;  %s2038_s3 = inlined_call_operand.vmem [shape: bf16[1,64], index: 3, kind: input, shape index: {}]   ;;  %s2039_s4 = inlined_call_operand.vmem [shape: f32[64,5], index: 4, kind: input, shape index: {}]   ;;  %s2040_s5 = inlined_call_operand.hbm [shape: f32[1,256], index: 5, kind: output, shape index: {}]  }
   0x1   :  { %11 = vsyncpa [#allocation4], 0  ;;  %s20_s20 = sshll.u32 %s2037_s2, 4  ;;  %s1653_s21 = smov [#allocation2]   ;;  %s21_s20 = int_to_ptr.hbm [resolvable:$true] %s20_s20 }
   0x2   :  { %s22_s22 = sshll.u32 %s1653_s21, 4  ;;  %s1654_s23 = smov 64   ;;  %s23_s22 = int_to_ptr.vmem [resolvable:$true] %s22_s22 }
   0x3   :  { %s1655_s24 = smov 4  }
   0x4   :  { %28 = dma.hbm_to_vmem [thread:$0]  %s21_s20, 2048, %s23_s22, [#allocation3], %s1654_s23, %s1654_s23, %s1655_s24  }
   0x5   :  { %1649 = dma.done.wait [#allocation3], 2048  }
   0x6   :  { %1650 = vsyncadd [#allocation3], 4294965248  ;;  %vm98_vm0 = vcmask 1043456   ;;  %v63_v0 = vld [vmem:[%s2035_s0] sm:$0xf]  ;;  %vm85_vm1 = vcmask 64512  }
   0x7   :  { %v64_v1 = vld [vmem:[%s2035_s0 + $0x4] sm:$0xf]  ;;  %v100_v2 = vsel %vm98_vm0, %v63_v0, 0  ;;  %v1549_v5 = vld [vmem:[%s2036_s1 + $0x18] sm:$0xff]  ;;  %v1547_v6 = vld [vmem:[%s2036_s1 + $0x8] sm:$0xff]  ;;  %v1656_v24 = vmov 0  }
   0x8   :  { %v132_v3 = vsel %vm98_vm0, %v64_v1, 0  ;;  %v1546_v4 = vld [vmem:[%s2036_s1] sm:$0xff]  ;;  %109 = vmatpush.bf16.msra.mxu0 %v100_v2  ;;  %1566 = vmatpush.bf16.msra.mxu2 %v100_v2  ;;  %v1548_v7 = vld [vmem:[%s2036_s1 + $0x10] sm:$0xff]  ;;  %v54_v31 = vld [vmem:[%s2039_s4 + $0x38] sm:$0xff]  ;;  %vm247_vm2 = vcmask 523264   ;;  %s1412_s30 = sshll.u32 %s2040_s5, 4  ;;  %s1413_s30 = int_to_ptr.hbm [resolvable:$true] %s1412_s30 }
   0x9   :  { %141 = vmatpush.bf16.msra.mxu1 %v132_v3  ;;  %1567 = vmatpush.bf16.msra.mxu3 %v132_v3  ;;  %v53_v25 = vld [vmem:[%s2039_s4 + $0x30] sm:$0xff]  ;;  %v51_v29 = vld [vmem:[%s2039_s4 + $0x20] sm:$0xff]  ;;  %v1737_v32 = vpack.c.bf16 %v54_v31, %v54_v31  ;;  %v52_v35 = vld [vmem:[%s2039_s4 + $0x28] sm:$0xff] }
   0xa   :  { %1578 = vset.pattern.permute.xlu0 %v1656_v24  ;;  %1579 = vset.pattern.permute.xlu1 %v1656_v24  ;;  %v1725_v26 = vpack.c.bf16 %v53_v25, %v53_v25  ;;  %v1731_v30 = vpack.c.bf16 %v51_v29, %v51_v29  ;;  %v47_v36 = vld [vmem:[%s2039_s4] sm:$0xff]  ;;  %v1746_v37 = vpack.c.bf16 %v52_v35, %v52_v35  ;;  %v48_v49 = vld [vmem:[%s2039_s4 + $0x8] sm:$0xff]  ;;  %v49_v63 = vld [vmem:[%s2039_s4 + $0x10] sm:$0xff] }
   0xb   :  { %1438 = vmatmul.msk.bf16.vlgmr.msra.gmra.mxu0 %vm85_vm1, %v1546_v4  ;;  %1441 = vmatmul.msk.bf16.vlgmr.msra.gmra.mxu2 %vm85_vm1, %v1549_v5  ;;  %v1748_v38 = vpack.c.bf16 %v47_v36, %v47_v36  ;;  %v1755_v52 = vpack.c.bf16 %v48_v49, %v48_v49  ;;  %v1550_v61 = vld [vmem:[#allocation2] sm:$0xff]  ;;  %v1551_v62 = vld [vmem:[#allocation2 + $0x8] sm:$0xff]  ;;  %v1769_v0 = vpack.c.bf16 %v49_v63, %v49_v63  ;;  %v50_v1 = vld [vmem:[%s2039_s4 + $0x18] sm:$0xff] }
   0xc   :  { %1442 = vmatmul.msk.bf16.vlgmr.msra.gmra.mxu1 %vm85_vm1, %v1546_v4  ;;  %1445 = vmatmul.msk.bf16.vlgmr.msra.gmra.mxu3 %vm85_vm1, %v1549_v5  ;;  %v1775_v2 = vpack.c.bf16 %v50_v1, %v50_v1  ;;  %v1552_v3 = vld [vmem:[#allocation2 + $0x10] sm:$0xff]  ;;  %v1553_v4 = vld [vmem:[#allocation2 + $0x18] sm:$0xff] }
   0xd   :  { %1580 = vset.pattern.permute.xlu2 %v1656_v24  ;;  %382 = vperm.xlu0 %1578, %v1725_v26  }
   0xe   :  { %364 = vperm.xlu1 %1579, %v1731_v30   ;;  %346 = vperm.xlu2 %1580, %v1769_v0  }
  0x15   :  { %391 = vperm.xlu0 %1578, %v1737_v32  }
  0x16   :  { %373 = vperm.xlu1 %1579, %v1746_v37   ;;  %355 = vperm.xlu2 %1580, %v1775_v2  }
  0x1b   :  { %1439 = vmatmul.msk.bf16.gmra.mxu0 %vm85_vm1, %v1547_v6 }
  0x1c   :  { %1443 = vmatmul.msk.bf16.gmra.mxu1 %vm85_vm1, %v1547_v6 }
  0x1d   :  { %328 = vperm.xlu0 %1578, %v1748_v38  }
  0x1e   :  { %337 = vperm.xlu1 %1579, %v1755_v52  }
  0x2b   :  { %1440 = vmatmul.msk.bf16.gmra.mxu0 %vm85_vm1, %v1548_v7 }
  0x2c   :  { %1444 = vmatmul.msk.bf16.gmra.mxu1 %vm85_vm1, %v1548_v7 }
  0x88   :  { %v1714_v8 = vpop.f32.mrf.mxu0 }
  0x89   :  { %v1716_v9 = vpop.f32.mrf.mxu1  ;;  %v179_v57 = vmax.f32 %v1714_v8, 0.0 }
  0x8a   :  { %v207_v58 = vmax.f32 %v1716_v9, 0.0 }
  0x8e   :  { %v126_v10 = vpop.f32.mrf.mxu2 }
  0x8f   :  { %v158_v11 = vpop.f32.mrf.mxu3  ;;  %v185_v14 = vmax.f32 %v126_v10, 0.0 }
  0x90   :  { %v1718_v12 = vpop.f32.mrf.mxu0  ;;  %v213_v15 = vmax.f32 %v158_v11, 0.0 }
  0x91   :  { %v1720_v13 = vpop.f32.mrf.mxu1  ;;  %v180_v53 = vmax.f32 %v1718_v12, 0.0 }
  0x92   :  { %v208_v54 = vmax.f32 %v1720_v13, 0.0  ;;  %v365_v13 = vpop.permute.xlu1 %364 }
  0x93   :  { %v187_v59 = vpack.c.bf16 %v180_v53, %v179_v57 }
  0x94   :  { %v215_v60 = vpack.c.bf16 %v208_v54, %v207_v58 }
  0x96   :  { %v128_v16 = vpop.f32.mrf.mxu2 }
  0x97   :  { %v160_v17 = vpop.f32.mrf.mxu3  ;;  %v186_v20 = vmax.f32 %v128_v16, 0.0 }
  0x98   :  { %v116_v18 = vpop.f32.mrf.mxu0  ;;  %v214_v21 = vmax.f32 %v160_v17, 0.0 }
  0x99   :  { %v148_v19 = vpop.f32.mrf.mxu1  ;;  %v190_v22 = vpack.c.bf16 %v186_v20, %v185_v14  ;;  %v181_v50 = vmax.f32 %v116_v18, 0.0  ;;  %v383_v14 = vpop.permute.xlu0 %382 }
  0x9a   :  { %v218_v23 = vpack.c.bf16 %v214_v21, %v213_v15  ;;  %v209_v51 = vmax.f32 %v148_v19, 0.0  ;;  %v374_v17 = vpop.permute.xlu1 %373  ;;  %v347_v18 = vpop.permute.xlu2 %346 }
  0x9b   :  { %264 = vmatpush.bf16.msrb.mxu2 %v190_v22  ;;  %v1657_v22 = vmov 839922192  }
  0x9c   :  { %293 = vmatpush.bf16.msrb.mxu3 %v218_v23  ;;  %v332_v23 = vunpack.c.l.s4 %v1657_v22 }
  0x9e   :  { %v1798_v24 = vunpack.c.0.s8 %v332_v23 }
  0xa0   :  { %v118_v27 = vpop.f32.mrf.mxu0  ;;  %v370_v29 = vperm.slane %v365_v13, %v1798_v24  ;;  %v379_v35 = vperm.slane %v374_v17, %v1798_v24 }
  0xa1   :  { %v150_v28 = vpop.f32.mrf.mxu1  ;;  %v182_v45 = vmax.f32 %v118_v27, 0.0  ;;  %v392_v19 = vpop.permute.xlu0 %391 }
  0xa2   :  { %v210_v46 = vmax.f32 %v150_v28, 0.0  ;;  %v338_v25 = vpop.permute.xlu1 %337  ;;  %v356_v27 = vpop.permute.xlu2 %355  ;;  %v388_v28 = vperm.slane %v383_v14, %v1798_v24 }
  0xa3   :  { %v188_v55 = vpack.c.bf16 %v182_v45, %v181_v50 }
  0xa4   :  { %v216_v56 = vpack.c.bf16 %v210_v46, %v209_v51  ;;  %v412_v45 = vunpack.c.l.bf16 %v388_v28  ;;  %v410_v46 = vunpack.c.l.bf16 %v370_v29  ;;  %v411_v51 = vunpack.c.l.bf16 %v379_v35 }
  0xa8   :  { %v121_v33 = vpop.f32.mrf.mxu0 }
  0xa9   :  { %v153_v34 = vpop.f32.mrf.mxu1  ;;  %v183_v41 = vmax.f32 %v121_v33, 0.0  ;;  %v1804_v36 = vpop.permute.xlu0 %328 }
  0xaa   :  { %v211_v42 = vmax.f32 %v153_v34, 0.0  ;;  %v397_v34 = vperm.slane %v392_v19, %v1798_v24 }
  0xb0   :  { %v123_v39 = vpop.f32.mrf.mxu0 }
  0xb1   :  { %v155_v40 = vpop.f32.mrf.mxu1  ;;  %v184_v43 = vmax.f32 %v123_v39, 0.0  ;;  %v343_v39 = vperm.slane %v338_v25, %v1798_v24 }
  0xb2   :  { %v212_v44 = vmax.f32 %v155_v40, 0.0  ;;  %v352_v40 = vperm.slane %v347_v18, %v1798_v24 }
  0xb3   :  { %v189_v47 = vpack.c.bf16 %v184_v43, %v183_v41  ;;  %v361_v41 = vperm.slane %v356_v27, %v1798_v24  ;;  %v1813_v53 = vunpack.c.l.bf16 %v343_v39 }
  0xb4   :  { %v217_v48 = vpack.c.bf16 %v212_v44, %v211_v42  ;;  %v1658_v44 = vmov 1  }
  0xb5   :  { %265 = vmatpush.bf16.msrb.mxu2 %v189_v47  ;;  %1583 = vset.pattern.permute.xlu1 %v1658_v44  ;;  %v413_v47 = vunpack.c.l.bf16 %v397_v34  ;;  %v409_v57 = vunpack.c.l.bf16 %v361_v41 }
  0xb6   :  { %294 = vmatpush.bf16.msrb.mxu3 %v217_v48  ;;  %1582 = vset.pattern.permute.xlu0 %v1658_v44  ;;  %v334_v48 = vperm.slane %v1804_v36, %v1798_v24 }
  0xb7   :  { %642 = vperm.xlu1 %1583, %v1731_v30   ;;  %666 = vperm.xlu0 %1582, %v1737_v32  }
  0xb8   :  { %1581 = vset.pattern.permute.xlu2 %v1658_v44 }
  0xb9   :  { %266 = vmatpush.bf16.msrb.mxu2 %v188_v55  ;;  %658 = vperm.xlu2 %1581, %v1725_v26  }
  0xba   :  { %295 = vmatpush.bf16.msrb.mxu3 %v216_v56  ;;  %v408_v56 = vunpack.c.l.bf16 %v352_v40 }
  0xbd   :  { %267 = vmatpush.bf16.msrb.mxu2 %v187_v59 }
  0xbe   :  { %296 = vmatpush.bf16.msrb.mxu3 %v215_v60 }
  0xbf   :  { %626 = vperm.xlu1 %1583, %v1769_v0   ;;  %610 = vperm.xlu0 %1582, %v1748_v38  }
  0xc0   :  { %1462 = vmatmul.msk.bf16.vlgmr.msrb.gmra.mxu2 %vm247_vm2, %v1550_v61 }
  0xc1   :  { %1466 = vmatmul.msk.bf16.vlgmr.msrb.gmra.mxu3 %vm247_vm2, %v1550_v61  ;;  %650 = vperm.xlu2 %1581, %v1746_v37  }
  0xc7   :  { %618 = vperm.xlu1 %1583, %v1755_v52  }
  0xc9   :  { %634 = vperm.xlu2 %1581, %v1775_v2  }
  0xd0   :  { %1463 = vmatmul.msk.bf16.gmra.mxu2 %vm247_vm2, %v1551_v62 }
  0xd1   :  { %1467 = vmatmul.msk.bf16.gmra.mxu3 %vm247_vm2, %v1551_v62 }
  0xe0   :  { %1464 = vmatmul.msk.bf16.gmra.mxu2 %vm247_vm2, %v1552_v3 }
  0xe1   :  { %1468 = vmatmul.msk.bf16.gmra.mxu3 %vm247_vm2, %v1552_v3 }
  0xf0   :  { %1465 = vmatmul.msk.bf16.gmra.mxu2 %vm247_vm2, %v1553_v4 }
  0xf1   :  { %1469 = vmatmul.msk.bf16.gmra.mxu3 %vm247_vm2, %v1553_v4 }
 0x143   :  { %v1782_v5 = vpop.f32.mrf.mxu2 }
 0x144   :  { %v1784_v6 = vpop.f32.mrf.mxu3  ;;  %v318_v60 = vpack.c.bf16 %v1782_v5, %v1782_v5 }
 0x145   :  { %v450_v61 = vpack.c.bf16 %v1784_v6, %v1784_v6 }
 0x14b   :  { %v1786_v7 = vpop.f32.mrf.mxu2 }
 0x14c   :  { %v1788_v8 = vpop.f32.mrf.mxu3 }
 0x153   :  { %v1790_v9 = vpop.f32.mrf.mxu2 }
 0x154   :  { %v1792_v10 = vpop.f32.mrf.mxu3 }
 0x155   :  { %v452_v5 = vpack.c.bf16 %v1792_v10, %v1792_v10 }
 0x157   :  { %v460_v29 = vunpack.c.l.bf16 %v452_v5 }
 0x15b   :  { %v1794_v11 = vpop.f32.mrf.mxu2 }
 0x15c   :  { %v1796_v12 = vpop.f32.mrf.mxu3  ;;  %v321_v62 = vpack.c.bf16 %v1794_v11, %v1794_v11 }
 0x15d   :  { %v453_v63 = vpack.c.bf16 %v1796_v12, %v1796_v12  ;;  %v319_v12 = vpack.c.bf16 %v1786_v7, %v1786_v7 }
 0x15e   :  { %v401_v22 = vunpack.c.l.bf16 %v321_v62 }
 0x15f   :  { %v461_v23 = vunpack.c.l.bf16 %v453_v63  ;;  %v399_v36 = vunpack.c.l.bf16 %v319_v12 }
 0x160   :  { %v417_v40 = vadd.f32 %v409_v57, %v401_v22 }
 0x161   :  { %v469_v41 = vadd.f32 %v461_v23, %v409_v57 }
 0x162   :  { %v441_v63 = vmax.f32 %v417_v40, 0.0 }
 0x163   :  { %v279_v15 = vpop.f32.mrf.mxu2 }
 0x164   :  { %v308_v16 = vpop.f32.mrf.mxu3  ;;  %v322_v54 = vpack.c.bf16 %v279_v15, %v279_v15 }
 0x165   :  { %v454_v55 = vpack.c.bf16 %v308_v16, %v308_v16  ;;  %v320_v16 = vpack.c.bf16 %v1790_v9, %v1790_v9 }
 0x166   :  { %v402_v17 = vunpack.c.l.bf16 %v322_v54  ;;  %v468_v54 = vadd.f32 %v460_v29, %v408_v56 }
 0x167   :  { %v462_v6 = vunpack.c.l.bf16 %v454_v55  ;;  %v400_v28 = vunpack.c.l.bf16 %v320_v16 }
 0x16b   :  { %v281_v20 = vpop.f32.mrf.mxu2 }
 0x16c   :  { %v310_v21 = vpop.f32.mrf.mxu3  ;;  %v323_v49 = vpack.c.bf16 %v281_v20, %v281_v20 }
 0x16d   :  { %v455_v50 = vpack.c.bf16 %v310_v21, %v310_v21  ;;  %v451_v21 = vpack.c.bf16 %v1788_v8, %v1788_v8 }
 0x16e   :  { %v403_v4 = vunpack.c.l.bf16 %v323_v49  ;;  %v406_v49 = vunpack.c.l.bf16 %v334_v48 }
 0x16f   :  { %v463_v13 = vunpack.c.l.bf16 %v455_v50  ;;  %v459_v39 = vunpack.c.l.bf16 %v451_v21  ;;  %v458_v50 = vunpack.c.l.bf16 %v450_v61  ;;  %v492_v61 = vmax.f32 %v468_v54, 0.0 }
 0x170   :  { %v419_v9 = vadd.f32 %v411_v51, %v403_v4 }
 0x171   :  { %v471_v10 = vadd.f32 %v463_v13, %v411_v51  ;;  %v416_v51 = vadd.f32 %v408_v56, %v400_v28 }
 0x172   :  { %v443_v44 = vmax.f32 %v419_v9, 0.0 }
 0x173   :  { %v284_v31 = vpop.f32.mrf.mxu2  ;;  %v440_v56 = vmax.f32 %v416_v51, 0.0 }
 0x174   :  { %v313_v33 = vpop.f32.mrf.mxu3  ;;  %v324_v42 = vpack.c.bf16 %v284_v31, %v284_v31  ;;  %v418_v31 = vadd.f32 %v410_v46, %v402_v17  ;;  %v1554_v17 = vld [vmem:[#allocation2 + $0x20] sm:$0xff] }
 0x175   :  { %v456_v43 = vpack.c.bf16 %v313_v33, %v313_v33  ;;  %v470_v33 = vadd.f32 %v462_v6, %v410_v46  ;;  %v1555_v6 = vld [vmem:[#allocation2 + $0x28] sm:$0xff] }
 0x176   :  { %v404_v58 = vunpack.c.l.bf16 %v324_v42  ;;  %v442_v46 = vmax.f32 %v418_v31, 0.0 }
 0x177   :  { %v464_v59 = vunpack.c.l.bf16 %v456_v43  ;;  %v494_v55 = vmax.f32 %v470_v33, 0.0 }
 0x178   :  { %v420_v18 = vadd.f32 %v412_v45, %v404_v58  ;;  %v415_v58 = vadd.f32 %v1813_v53, %v399_v36  ;;  %v448_v57 = vpack.c.bf16 %v443_v44, %v442_v46  ;;  %v1659_v46 = vmov 2  }
 0x179   :  { %v472_v19 = vadd.f32 %v464_v59, %v412_v45  ;;  %v495_v45 = vmax.f32 %v471_v10, 0.0  ;;  %v467_v59 = vadd.f32 %v459_v39, %v1813_v53  ;;  %1586 = vset.pattern.permute.xlu1 %v1659_v46  ;;  %1585 = vset.pattern.permute.xlu0 %v1659_v46 }
 0x17a   :  { %v444_v7 = vmax.f32 %v420_v18, 0.0  ;;  %v439_v13 = vmax.f32 %v415_v58, 0.0  ;;  %v1556_v18 = vld [vmem:[#allocation2 + $0x30] sm:$0xff]  ;;  %917 = vperm.xlu1 %1586, %v1731_v30   ;;  %941 = vperm.xlu0 %1585, %v1737_v32  }
 0x17b   :  { %v286_v1 = vpop.f32.mrf.mxu2  ;;  %v496_v35 = vmax.f32 %v472_v19, 0.0  ;;  %v500_v62 = vpack.c.bf16 %v495_v45, %v494_v55  ;;  %v1557_v19 = vld [vmem:[#allocation2 + $0x38] sm:$0xff]  ;;  %1584 = vset.pattern.permute.xlu2 %v1659_v46 }
 0x17c   :  { %v315_v3 = vpop.f32.mrf.mxu3  ;;  %v325_v14 = vpack.c.bf16 %v286_v1, %v286_v1  ;;  %v493_v1 = vmax.f32 %v469_v41, 0.0  ;;  %933 = vperm.xlu2 %1584, %v1725_v26  }
 0x17d   :  { %v457_v15 = vpack.c.bf16 %v315_v3, %v315_v3  ;;  %v447_v3 = vpack.c.bf16 %v441_v63, %v440_v56 }
 0x17e   :  { %v405_v11 = vunpack.c.l.bf16 %v325_v14  ;;  %v499_v4 = vpack.c.bf16 %v493_v1, %v492_v61  ;;  %v491_v14 = vmax.f32 %v467_v59, 0.0 }
 0x17f   :  { %v465_v20 = vunpack.c.l.bf16 %v457_v15 }
 0x180   :  { %v421_v25 = vadd.f32 %v413_v47, %v405_v11 }
 0x181   :  { %v473_v27 = vadd.f32 %v465_v20, %v413_v47  ;;  %v398_v47 = vunpack.c.l.bf16 %v318_v60  ;;  %v466_v60 = vadd.f32 %v458_v50, %v406_v49 }
 0x182   :  { %v445_v34 = vmax.f32 %v421_v25, 0.0  ;;  %v643_v25 = vpop.permute.xlu1 %642  ;;  %901 = vperm.xlu1 %1586, %v1769_v0   ;;  %885 = vperm.xlu0 %1585, %v1748_v38  }
 0x183   :  { %v497_v8 = vmax.f32 %v473_v27, 0.0  ;;  %v414_v48 = vadd.f32 %v406_v49, %v398_v47  ;;  %v490_v15 = vmax.f32 %v466_v60, 0.0  ;;  %v659_v27 = vpop.permute.xlu2 %658  ;;  %v648_v39 = vperm.slane %v643_v25, %v1798_v24 }
 0x184   :  { %v449_v42 = vpack.c.bf16 %v445_v34, %v444_v7  ;;  %v667_v7 = vpop.permute.xlu0 %666  ;;  %v664_v45 = vperm.slane %v659_v27, %v1798_v24  ;;  %925 = vperm.xlu2 %1584, %v1746_v37  }
 0x185   :  { %v501_v43 = vpack.c.bf16 %v497_v8, %v496_v35  ;;  %v438_v53 = vmax.f32 %v414_v48, 0.0  ;;  %v498_v5 = vpack.c.bf16 %v491_v14, %v490_v15  ;;  %v672_v40 = vperm.slane %v667_v7, %v1798_v24 }
 0x186   :  { %547 = vmatpush.bf16.msrb.mxu0 %v449_v42  ;;  %v685_v55 = vunpack.c.l.bf16 %v648_v39  ;;  %v687_v1 = vunpack.c.l.bf16 %v664_v45 }
 0x187   :  { %576 = vmatpush.bf16.msrb.mxu1 %v501_v43  ;;  %v446_v16 = vpack.c.bf16 %v439_v13, %v438_v53  ;;  %v688_v58 = vunpack.c.l.bf16 %v672_v40 }
 0x18a   :  { %548 = vmatpush.bf16.msrb.mxu0 %v448_v57  ;;  %v627_v31 = vpop.permute.xlu1 %626  ;;  %893 = vperm.xlu1 %1586, %v1755_v52  }
 0x18b   :  { %577 = vmatpush.bf16.msrb.mxu1 %v500_v62  ;;  %v651_v33 = vpop.permute.xlu2 %650  ;;  %v632_v43 = vperm.slane %v627_v31, %v1798_v24 }
 0x18c   :  { %v1866_v44 = vpop.permute.xlu0 %610  ;;  %v656_v47 = vperm.slane %v651_v33, %v1798_v24  ;;  %909 = vperm.xlu2 %1584, %v1775_v2  }
 0x18d   :  { %v1874_v59 = vunpack.c.l.bf16 %v632_v43  ;;  %v616_v57 = vperm.slane %v1866_v44, %v1798_v24 }
 0x18e   :  { %549 = vmatpush.bf16.msrb.mxu0 %v447_v3  ;;  %v686_v61 = vunpack.c.l.bf16 %v656_v47 }
 0x18f   :  { %578 = vmatpush.bf16.msrb.mxu1 %v499_v4 }
 0x192   :  { %550 = vmatpush.bf16.msrb.mxu0 %v446_v16  ;;  %v619_v8 = vpop.permute.xlu1 %618 }
 0x193   :  { %579 = vmatpush.bf16.msrb.mxu1 %v498_v5  ;;  %v635_v36 = vpop.permute.xlu2 %634  ;;  %v624_v49 = vperm.slane %v619_v8, %v1798_v24 }
 0x194   :  { %v640_v50 = vperm.slane %v635_v36, %v1798_v24 }
 0x195   :  { %1486 = vmatmul.msk.bf16.vlgmr.msrb.gmra.mxu0 %vm247_vm2, %v1554_v17  ;;  %v1878_v48 = vunpack.c.l.bf16 %v624_v49 }
 0x196   :  { %1490 = vmatmul.msk.bf16.vlgmr.msrb.gmra.mxu1 %vm247_vm2, %v1554_v17  ;;  %v684_v3 = vunpack.c.l.bf16 %v640_v50 }
 0x1a5   :  { %1487 = vmatmul.msk.bf16.gmra.mxu0 %vm247_vm2, %v1555_v6 }
 0x1a6   :  { %1491 = vmatmul.msk.bf16.gmra.mxu1 %vm247_vm2, %v1555_v6 }
 0x1b5   :  { %1488 = vmatmul.msk.bf16.gmra.mxu0 %vm247_vm2, %v1556_v18 }
 0x1b6   :  { %1492 = vmatmul.msk.bf16.gmra.mxu1 %vm247_vm2, %v1556_v18 }
 0x1c5   :  { %1489 = vmatmul.msk.bf16.gmra.mxu0 %vm247_vm2, %v1557_v19 }
 0x1c6   :  { %1493 = vmatmul.msk.bf16.gmra.mxu1 %vm247_vm2, %v1557_v19 }
 0x212   :  { %v1847_v11 = vpop.f32.mrf.mxu0 }
 0x213   :  { %v1849_v20 = vpop.f32.mrf.mxu1  ;;  %v601_v14 = vpack.c.bf16 %v1847_v11, %v1847_v11 }
 0x214   :  { %v725_v53 = vpack.c.bf16 %v1849_v20, %v1849_v20 }
 0x21a   :  { %v1851_v12 = vpop.f32.mrf.mxu0 }
 0x21b   :  { %v1853_v21 = vpop.f32.mrf.mxu1 }
 0x21c   :  { %v726_v7 = vpack.c.bf16 %v1853_v21, %v1853_v21 }
 0x21e   :  { %v734_v49 = vunpack.c.l.bf16 %v726_v7 }
 0x222   :  { %v1855_v22 = vpop.f32.mrf.mxu0 }
 0x223   :  { %v1857_v23 = vpop.f32.mrf.mxu1  ;;  %v603_v27 = vpack.c.bf16 %v1855_v22, %v1855_v22 }
 0x224   :  { %v727_v11 = vpack.c.bf16 %v1857_v23, %v1857_v23 }
 0x225   :  { %v675_v39 = vunpack.c.l.bf16 %v603_v27 }
 0x226   :  { %v735_v40 = vunpack.c.l.bf16 %v727_v11 }
 0x22a   :  { %v1859_v9 = vpop.f32.mrf.mxu0 }
 0x22b   :  { %v1861_v10 = vpop.f32.mrf.mxu1  ;;  %v604_v15 = vpack.c.bf16 %v1859_v9, %v1859_v9 }
 0x22c   :  { %v728_v16 = vpack.c.bf16 %v1861_v10, %v1861_v10  ;;  %v602_v10 = vpack.c.bf16 %v1851_v12, %v1851_v12 }
 0x22e   :  { %v674_v45 = vunpack.c.l.bf16 %v602_v10 }
 0x232   :  { %v562_v28 = vpop.f32.mrf.mxu0 }
 0x233   :  { %v591_v29 = vpop.f32.mrf.mxu1  ;;  %v605_v60 = vpack.c.bf16 %v562_v28, %v562_v28 }
 0x234   :  { %v729_v56 = vpack.c.bf16 %v591_v29, %v591_v29 }
 0x235   :  { %v677_v28 = vunpack.c.l.bf16 %v605_v60  ;;  %v691_v60 = vadd.f32 %v1874_v59, %v675_v39 }
 0x236   :  { %v737_v20 = vunpack.c.l.bf16 %v729_v56 }
 0x23a   :  { %v564_v34 = vpop.f32.mrf.mxu0 }
 0x23b   :  { %v593_v35 = vpop.f32.mrf.mxu1  ;;  %v606_v62 = vpack.c.bf16 %v564_v34, %v564_v34  ;;  %v676_v34 = vunpack.c.l.bf16 %v604_v15 }
 0x23c   :  { %v730_v63 = vpack.c.bf16 %v593_v35, %v593_v35  ;;  %v736_v35 = vunpack.c.l.bf16 %v728_v16 }
 0x23d   :  { %v678_v6 = vunpack.c.l.bf16 %v606_v62  ;;  %v692_v47 = vadd.f32 %v684_v3, %v676_v34 }
 0x23e   :  { %v738_v18 = vunpack.c.l.bf16 %v730_v63  ;;  %v744_v50 = vadd.f32 %v736_v35, %v684_v3  ;;  %v681_v63 = vunpack.c.l.bf16 %v616_v57 }
 0x23f   :  { %v694_v22 = vadd.f32 %v686_v61, %v678_v6  ;;  %v716_v3 = vmax.f32 %v692_v47, 0.0 }
 0x240   :  { %v746_v23 = vadd.f32 %v738_v18, %v686_v61  ;;  %v768_v15 = vmax.f32 %v744_v50, 0.0 }
 0x242   :  { %v567_v41 = vpop.f32.mrf.mxu0 }
 0x243   :  { %v596_v42 = vpop.f32.mrf.mxu1  ;;  %v607_v51 = vpack.c.bf16 %v567_v41, %v567_v41  ;;  %v693_v41 = vadd.f32 %v685_v55, %v677_v28  ;;  %v1558_v28 = vld [vmem:[#allocation2 + $0x40] sm:$0xff] }
 0x244   :  { %v731_v54 = vpack.c.bf16 %v596_v42, %v596_v42  ;;  %v745_v42 = vadd.f32 %v737_v20, %v685_v55  ;;  %v743_v55 = vadd.f32 %v735_v40, %v1874_v59  ;;  %v1559_v20 = vld [vmem:[#allocation2 + $0x48] sm:$0xff] }
 0x245   :  { %v679_v4 = vunpack.c.l.bf16 %v607_v51  ;;  %v718_v51 = vmax.f32 %v694_v22, 0.0  ;;  %v717_v56 = vmax.f32 %v693_v41, 0.0 }
 0x246   :  { %v739_v13 = vunpack.c.l.bf16 %v731_v54  ;;  %v770_v54 = vmax.f32 %v746_v23, 0.0  ;;  %v769_v61 = vmax.f32 %v745_v42, 0.0  ;;  %v767_v59 = vmax.f32 %v743_v55, 0.0 }
 0x247   :  { %v695_v29 = vadd.f32 %v687_v1, %v679_v4  ;;  %v690_v4 = vadd.f32 %v1878_v48, %v674_v45  ;;  %v723_v16 = vpack.c.bf16 %v718_v51, %v717_v56  ;;  %v1660_v56 = vmov 3  }
 0x248   :  { %v747_v31 = vadd.f32 %v739_v13, %v687_v1  ;;  %v733_v1 = vunpack.c.l.bf16 %v725_v53  ;;  %v742_v13 = vadd.f32 %v734_v49, %v1878_v48  ;;  %v775_v57 = vpack.c.bf16 %v770_v54, %v769_v61  ;;  %1589 = vset.pattern.permute.xlu1 %v1660_v56  ;;  %1588 = vset.pattern.permute.xlu0 %v1660_v56 }
 0x249   :  { %v719_v12 = vmax.f32 %v695_v29, 0.0  ;;  %v1560_v29 = vld [vmem:[#allocation2 + $0x50] sm:$0xff]  ;;  %1192 = vperm.xlu1 %1589, %v1731_v30   ;;  %1216 = vperm.xlu0 %1588, %v1737_v32  }
 0x24a   :  { %v569_v5 = vpop.f32.mrf.mxu0  ;;  %v771_v43 = vmax.f32 %v747_v31, 0.0  ;;  %v741_v53 = vadd.f32 %v733_v1, %v681_v63  ;;  %v766_v6 = vmax.f32 %v742_v13, 0.0  ;;  %v1561_v31 = vld [vmem:[#allocation2 + $0x58] sm:$0xff]  ;;  %1587 = vset.pattern.permute.xlu2 %v1660_v56 }
 0x24b   :  { %v598_v17 = vpop.f32.mrf.mxu1  ;;  %v608_v19 = vpack.c.bf16 %v569_v5, %v569_v5  ;;  %v715_v5 = vmax.f32 %v691_v60, 0.0  ;;  %1208 = vperm.xlu2 %1587, %v1725_v26  }
 0x24c   :  { %v732_v25 = vpack.c.bf16 %v598_v17, %v598_v17  ;;  %v714_v17 = vmax.f32 %v690_v4, 0.0  ;;  %v765_v48 = vmax.f32 %v741_v53, 0.0 }
 0x24d   :  { %v680_v9 = vunpack.c.l.bf16 %v608_v19  ;;  %v722_v18 = vpack.c.bf16 %v716_v3, %v715_v5  ;;  %v774_v19 = vpack.c.bf16 %v768_v15, %v767_v59 }
 0x24e   :  { %v740_v33 = vunpack.c.l.bf16 %v732_v25  ;;  %v773_v11 = vpack.c.bf16 %v766_v6, %v765_v48 }
 0x24f   :  { %v696_v8 = vadd.f32 %v688_v58, %v680_v9 }
 0x250   :  { %v748_v36 = vadd.f32 %v740_v33, %v688_v58  ;;  %v673_v58 = vunpack.c.l.bf16 %v601_v14 }
 0x251   :  { %v720_v44 = vmax.f32 %v696_v8, 0.0  ;;  %v918_v8 = vpop.permute.xlu1 %917  ;;  %1176 = vperm.xlu1 %1589, %v1769_v0   ;;  %1160 = vperm.xlu0 %1588, %v1748_v38  }
 0x252   :  { %v772_v21 = vmax.f32 %v748_v36, 0.0  ;;  %v689_v14 = vadd.f32 %v681_v63, %v673_v58  ;;  %v934_v36 = vpop.permute.xlu2 %933  ;;  %v923_v49 = vperm.slane %v918_v8, %v1798_v24 }
 0x253   :  { %v724_v46 = vpack.c.bf16 %v720_v44, %v719_v12  ;;  %v942_v12 = vpop.permute.xlu0 %941  ;;  %1200 = vperm.xlu2 %1587, %v1746_v37  }
 0x254   :  { %v776_v62 = vpack.c.bf16 %v772_v21, %v771_v43  ;;  %v713_v25 = vmax.f32 %v689_v14, 0.0  ;;  %v947_v47 = vperm.slane %v942_v12, %v1798_v24  ;;  %v960_v61 = vunpack.c.l.bf16 %v923_v49 }
 0x255   :  { %822 = vmatpush.bf16.msra.mxu2 %v724_v46 }
 0x256   :  { %851 = vmatpush.bf16.msra.mxu3 %v776_v62  ;;  %v721_v27 = vpack.c.bf16 %v714_v17, %v713_v25  ;;  %v939_v62 = vperm.slane %v934_v36, %v1798_v24  ;;  %v963_v4 = vunpack.c.l.bf16 %v947_v47 }
 0x259   :  { %823 = vmatpush.bf16.msra.mxu2 %v723_v16  ;;  %v902_v41 = vpop.permute.xlu1 %901  ;;  %1168 = vperm.xlu1 %1589, %v1755_v52  }
 0x25a   :  { %852 = vmatpush.bf16.msra.mxu3 %v775_v57  ;;  %v926_v42 = vpop.permute.xlu2 %925  ;;  %v907_v54 = vperm.slane %v902_v41, %v1798_v24  ;;  %v962_v57 = vunpack.c.l.bf16 %v939_v62 }
 0x25b   :  { %v1933_v46 = vpop.permute.xlu0 %885  ;;  %v931_v58 = vperm.slane %v926_v42, %v1798_v24  ;;  %1184 = vperm.xlu2 %1587, %v1775_v2   ;;  %v1563_v2 = vld [vmem:[#allocation2 + $0x68] sm:$0xff] }
 0x25c   :  { %v1941_v13 = vunpack.c.l.bf16 %v907_v54  ;;  %v891_v3 = vperm.slane %v1933_v46, %v1798_v24 }
 0x25d   :  { %824 = vmatpush.bf16.msra.mxu2 %v722_v18  ;;  %v961_v59 = vunpack.c.l.bf16 %v931_v58 }
 0x25e   :  { %853 = vmatpush.bf16.msra.mxu3 %v774_v19 }
 0x261   :  { %825 = vmatpush.bf16.msra.mxu2 %v721_v27  ;;  %v894_v21 = vpop.permute.xlu1 %893 }
 0x262   :  { %854 = vmatpush.bf16.msra.mxu3 %v773_v11  ;;  %v910_v45 = vpop.permute.xlu2 %909  ;;  %v899_v63 = vperm.slane %v894_v21, %v1798_v24 }
 0x263   :  { %v915_v1 = vperm.slane %v910_v45, %v1798_v24 }
 0x264   :  { %1510 = vmatmul.msk.bf16.vlgmr.msra.gmra.mxu2 %vm247_vm2, %v1558_v28  ;;  %v1945_v14 = vunpack.c.l.bf16 %v899_v63 }
 0x265   :  { %1514 = vmatmul.msk.bf16.vlgmr.msra.gmra.mxu3 %vm247_vm2, %v1558_v28  ;;  %v959_v17 = vunpack.c.l.bf16 %v915_v1  ;;  %v956_v1 = vunpack.c.l.bf16 %v891_v3 }
 0x274   :  { %1511 = vmatmul.msk.bf16.gmra.mxu2 %vm247_vm2, %v1559_v20 }
 0x275   :  { %1515 = vmatmul.msk.bf16.gmra.mxu3 %vm247_vm2, %v1559_v20 }
 0x284   :  { %1512 = vmatmul.msk.bf16.gmra.mxu2 %vm247_vm2, %v1560_v29 }
 0x285   :  { %1516 = vmatmul.msk.bf16.gmra.mxu3 %vm247_vm2, %v1560_v29 }
 0x294   :  { %1513 = vmatmul.msk.bf16.gmra.mxu2 %vm247_vm2, %v1561_v31 }
 0x295   :  { %1517 = vmatmul.msk.bf16.gmra.mxu3 %vm247_vm2, %v1561_v31 }
 0x2e7   :  { %v1914_v9 = vpop.f32.mrf.mxu2 }
 0x2e8   :  { %v1916_v33 = vpop.f32.mrf.mxu3  ;;  %v876_v32 = vpack.c.bf16 %v1914_v9, %v1914_v9 }
 0x2e9   :  { %v1000_v18 = vpack.c.bf16 %v1916_v33, %v1916_v33 }
 0x2ef   :  { %v1918_v10 = vpop.f32.mrf.mxu2 }
 0x2f0   :  { %v1920_v7 = vpop.f32.mrf.mxu3 }
 0x2f7   :  { %v1922_v34 = vpop.f32.mrf.mxu2 }
 0x2f8   :  { %v1924_v35 = vpop.f32.mrf.mxu3  ;;  %v878_v29 = vpack.c.bf16 %v1922_v34, %v1922_v34 }
 0x2f9   :  { %v1002_v31 = vpack.c.bf16 %v1924_v35, %v1924_v35 }
 0x2fb   :  { %v1010_v21 = vunpack.c.l.bf16 %v1002_v31 }
 0x2ff   :  { %v1926_v22 = vpop.f32.mrf.mxu2 }
 0x300   :  { %v1928_v23 = vpop.f32.mrf.mxu3  ;;  %v879_v19 = vpack.c.bf16 %v1926_v22, %v1926_v22 }
 0x301   :  { %v1003_v25 = vpack.c.bf16 %v1928_v23, %v1928_v23  ;;  %v877_v23 = vpack.c.bf16 %v1918_v10, %v1918_v10 }
 0x302   :  { %v951_v41 = vunpack.c.l.bf16 %v879_v19 }
 0x303   :  { %v1011_v42 = vunpack.c.l.bf16 %v1003_v25 }
 0x304   :  { %v967_v46 = vadd.f32 %v959_v17, %v951_v41 }
 0x305   :  { %v1019_v0 = vadd.f32 %v1011_v42, %v959_v17 }
 0x307   :  { %v837_v39 = vpop.f32.mrf.mxu2 }
 0x308   :  { %v866_v40 = vpop.f32.mrf.mxu3  ;;  %v880_v53 = vpack.c.bf16 %v837_v39, %v837_v39 }
 0x309   :  { %v1004_v5 = vpack.c.bf16 %v866_v40, %v866_v40  ;;  %v1001_v40 = vpack.c.bf16 %v1920_v7, %v1920_v7 }
 0x30a   :  { %v952_v9 = vunpack.c.l.bf16 %v880_v53  ;;  %v1043_v53 = vmax.f32 %v1019_v0, 0.0 }
 0x30b   :  { %v1012_v33 = vunpack.c.l.bf16 %v1004_v5  ;;  %v1009_v54 = vunpack.c.l.bf16 %v1001_v40 }
 0x30c   :  { %v968_v45 = vadd.f32 %v960_v61, %v952_v9 }
 0x30d   :  { %v1020_v49 = vadd.f32 %v1012_v33, %v960_v61  ;;  %v1018_v61 = vadd.f32 %v1010_v21, %v1941_v13 }
 0x30e   :  { %v992_v37 = vmax.f32 %v968_v45, 0.0 }
 0x30f   :  { %v839_v43 = vpop.f32.mrf.mxu2 }
 0x310   :  { %v868_v44 = vpop.f32.mrf.mxu3  ;;  %v881_v15 = vpack.c.bf16 %v839_v43, %v839_v43 }
 0x311   :  { %v1005_v16 = vpack.c.bf16 %v868_v44, %v868_v44  ;;  %v950_v44 = vunpack.c.l.bf16 %v878_v29 }
 0x312   :  { %v953_v11 = vunpack.c.l.bf16 %v881_v15 }
 0x313   :  { %v1013_v26 = vunpack.c.l.bf16 %v1005_v16  ;;  %v966_v56 = vadd.f32 %v1941_v13, %v950_v44  ;;  %v1017_v16 = vadd.f32 %v1009_v54, %v1945_v14  ;;  %v1042_v13 = vmax.f32 %v1018_v61, 0.0 }
 0x314   :  { %v969_v34 = vadd.f32 %v961_v59, %v953_v11  ;;  %v1564_v11 = vld [vmem:[#allocation2 + $0x70] sm:$0xff] }
 0x315   :  { %v1021_v35 = vadd.f32 %v1013_v26, %v961_v59  ;;  %v1049_v19 = vpack.c.bf16 %v1043_v53, %v1042_v13  ;;  %v1565_v26 = vld [vmem:[#allocation2 + $0x78] sm:$0xff] }
 0x316   :  { %v993_v62 = vmax.f32 %v969_v34, 0.0  ;;  %v1217_v34 = vpop.permute.xlu0 %1216 }
 0x317   :  { %v842_v50 = vpop.f32.mrf.mxu2  ;;  %v1045_v38 = vmax.f32 %v1021_v35, 0.0  ;;  %v1222_v45 = vperm.slane %v1217_v34, %v1798_v24 }
 0x318   :  { %v871_v51 = vpop.f32.mrf.mxu3  ;;  %v882_v60 = vpack.c.bf16 %v842_v50, %v842_v50  ;;  %v998_v5 = vpack.c.bf16 %v993_v62, %v992_v37 }
 0x319   :  { %v1006_v55 = vpack.c.bf16 %v871_v51, %v871_v51  ;;  %v949_v51 = vunpack.c.l.bf16 %v877_v23 }
 0x31a   :  { %v954_v30 = vunpack.c.l.bf16 %v882_v60  ;;  %v948_v60 = vunpack.c.l.bf16 %v876_v32  ;;  %v1041_v32 = vmax.f32 %v1017_v16, 0.0 }
 0x31b   :  { %v1014_v6 = vunpack.c.l.bf16 %v1006_v55  ;;  %v1008_v55 = vunpack.c.l.bf16 %v1000_v18  ;;  %v965_v15 = vadd.f32 %v1945_v14, %v949_v51 }
 0x31c   :  { %v970_v8 = vadd.f32 %v962_v57, %v954_v30  ;;  %v964_v59 = vadd.f32 %v956_v1, %v948_v60  ;;  %v990_v30 = vmax.f32 %v966_v56, 0.0 }
 0x31d   :  { %v1022_v36 = vadd.f32 %v1014_v6, %v962_v57  ;;  %v991_v57 = vmax.f32 %v967_v46, 0.0  ;;  %v1016_v17 = vadd.f32 %v1008_v55, %v956_v1  ;;  %v989_v6 = vmax.f32 %v965_v15, 0.0  ;;  %v1600_v1 = vld [vmem:[%s2039_s4] sm:$0xff] }
 0x31e   :  { %v994_v10 = vmax.f32 %v970_v8, 0.0  ;;  %v988_v25 = vmax.f32 %v964_v59, 0.0 }
 0x31f   :  { %v844_v48 = vpop.f32.mrf.mxu2  ;;  %v1046_v47 = vmax.f32 %v1022_v36, 0.0  ;;  %v997_v18 = vpack.c.bf16 %v991_v57, %v990_v30  ;;  %v1040_v14 = vmax.f32 %v1016_v17, 0.0 }
 0x320   :  { %v873_v27 = vpop.f32.mrf.mxu3  ;;  %v883_v28 = vpack.c.bf16 %v844_v48, %v844_v48  ;;  %v996_v52 = vpack.c.bf16 %v989_v6, %v988_v25 }
 0x321   :  { %v1007_v20 = vpack.c.bf16 %v873_v27, %v873_v27  ;;  %v1048_v48 = vpack.c.bf16 %v1041_v32, %v1040_v14  ;;  %v1562_v27 = vld [vmem:[#allocation2 + $0x60] sm:$0xff] }
 0x322   :  { %v955_v22 = vunpack.c.l.bf16 %v883_v28 }
 0x323   :  { %v1015_v39 = vunpack.c.l.bf16 %v1007_v20 }
 0x324   :  { %v971_v12 = vadd.f32 %v963_v4, %v955_v22  ;;  %v1193_v22 = vpop.permute.xlu1 %1192 }
 0x325   :  { %v1023_v43 = vadd.f32 %v1015_v39, %v963_v4  ;;  %v1044_v4 = vmax.f32 %v1020_v49, 0.0  ;;  %v1209_v39 = vpop.permute.xlu2 %1208  ;;  %v1198_v21 = vperm.slane %v1193_v22, %v1798_v24 }
 0x326   :  { %v995_v50 = vmax.f32 %v971_v12, 0.0 }
 0x327   :  { %v1047_v7 = vmax.f32 %v1023_v43, 0.0  ;;  %v1050_v3 = vpack.c.bf16 %v1045_v38, %v1044_v4  ;;  %v1661_v38 = vmov 4  }
 0x328   :  { %v999_v63 = vpack.c.bf16 %v995_v50, %v994_v10  ;;  %v2000_v50 = vpop.permute.xlu0 %1160  ;;  %1590 = vset.pattern.permute.xlu2 %v1661_v38  ;;  %1591 = vset.pattern.permute.xlu0 %v1661_v38 }
 0x329   :  { %v1051_v58 = vpack.c.bf16 %v1047_v7, %v1046_v47  ;;  %v1214_v7 = vperm.slane %v1209_v39, %v1798_v24  ;;  %1329 = vperm.xlu2 %1590, %v1600_v1   ;;  %v1166_v55 = vperm.slane %v2000_v50, %v1798_v24 }
 0x32a   :  { %1097 = vmatpush.bf16.msra.mxu0 %v999_v63  ;;  %v1235_v63 = vunpack.c.l.bf16 %v1198_v21 }
 0x32b   :  { %1126 = vmatpush.bf16.msra.mxu1 %v1051_v58  ;;  %v1238_v58 = vunpack.c.l.bf16 %v1222_v45  ;;  %v1237_v37 = vunpack.c.l.bf16 %v1214_v7  ;;  %v1231_v7 = vunpack.c.l.bf16 %v1166_v55 }
 0x32c   :  { %v1177_v41 = vpop.permute.xlu1 %1176 }
 0x32d   :  { %v1201_v42 = vpop.permute.xlu2 %1200  ;;  %v1182_v47 = vperm.slane %v1177_v41, %v1798_v24 }
 0x32e   :  { %1098 = vmatpush.bf16.msra.mxu0 %v998_v5  ;;  %v1206_v54 = vperm.slane %v1201_v42, %v1798_v24 }
 0x32f   :  { %1127 = vmatpush.bf16.msra.mxu1 %v1050_v3  ;;  %v1233_v60 = vunpack.c.l.bf16 %v1182_v47 }
 0x330   :  { %v1236_v57 = vunpack.c.l.bf16 %v1206_v54 }
 0x332   :  { %1099 = vmatpush.bf16.msra.mxu0 %v997_v18 }
 0x333   :  { %1128 = vmatpush.bf16.msra.mxu1 %v1049_v19 }
 0x334   :  { %v1169_v43 = vpop.permute.xlu1 %1168 }
 0x335   :  { %v1185_v44 = vpop.permute.xlu2 %1184  ;;  %v1174_v51 = vperm.slane %v1169_v43, %v1798_v24 }
 0x336   :  { %1100 = vmatpush.bf16.msra.mxu0 %v996_v52  ;;  %v1190_v46 = vperm.slane %v1185_v44, %v1798_v24 }
 0x337   :  { %1129 = vmatpush.bf16.msra.mxu1 %v1048_v48  ;;  %v1232_v4 = vunpack.c.l.bf16 %v1174_v51 }
 0x338   :  { %v1234_v53 = vunpack.c.l.bf16 %v1190_v46 }
 0x339   :  { %1534 = vmatmul.msk.bf16.vlgmr.msra.gmra.mxu0 %vm247_vm2, %v1562_v27 }
 0x33a   :  { %1538 = vmatmul.msk.bf16.vlgmr.msra.gmra.mxu1 %vm247_vm2, %v1562_v27 }
 0x349   :  { %1535 = vmatmul.msk.bf16.gmra.mxu0 %vm247_vm2, %v1563_v2 }
 0x34a   :  { %1539 = vmatmul.msk.bf16.gmra.mxu1 %vm247_vm2, %v1563_v2 }
 0x359   :  { %1536 = vmatmul.msk.bf16.gmra.mxu0 %vm247_vm2, %v1564_v11 }
 0x35a   :  { %1540 = vmatmul.msk.bf16.gmra.mxu1 %vm247_vm2, %v1564_v11 }
 0x369   :  { %1537 = vmatmul.msk.bf16.gmra.mxu0 %vm247_vm2, %v1565_v26 }
 0x36a   :  { %1541 = vmatmul.msk.bf16.gmra.mxu1 %vm247_vm2, %v1565_v26 }
 0x3b6   :  { %v1981_v28 = vpop.f32.mrf.mxu0 }
 0x3b7   :  { %v1983_v20 = vpop.f32.mrf.mxu1  ;;  %v1151_v59 = vpack.c.bf16 %v1981_v28, %v1981_v28 }
 0x3b8   :  { %v1275_v17 = vpack.c.bf16 %v1983_v20, %v1983_v20 }
 0x3b9   :  { %v1223_v51 = vunpack.c.l.bf16 %v1151_v59 }
 0x3ba   :  { %v1283_v54 = vunpack.c.l.bf16 %v1275_v17 }
 0x3be   :  { %v1985_v29 = vpop.f32.mrf.mxu0 }
 0x3bf   :  { %v1987_v31 = vpop.f32.mrf.mxu1  ;;  %v1152_v20 = vpack.c.bf16 %v1985_v29, %v1985_v29 }
 0x3c1   :  { %v1224_v21 = vunpack.c.l.bf16 %v1152_v20 }
 0x3c6   :  { %v1989_v9 = vpop.f32.mrf.mxu0 }
 0x3c7   :  { %v1991_v33 = vpop.f32.mrf.mxu1  ;;  %v1153_v14 = vpack.c.bf16 %v1989_v9, %v1989_v9 }
 0x3c8   :  { %v1277_v52 = vpack.c.bf16 %v1991_v33, %v1991_v33 }
 0x3c9   :  { %v1225_v41 = vunpack.c.l.bf16 %v1153_v14 }
 0x3ca   :  { %v1285_v33 = vunpack.c.l.bf16 %v1277_v52 }
 0x3cb   :  { %v1241_v46 = vadd.f32 %v1233_v60, %v1225_v41 }
 0x3ce   :  { %v1993_v8 = vpop.f32.mrf.mxu0 }
 0x3cf   :  { %v1995_v36 = vpop.f32.mrf.mxu1  ;;  %v1154_v30 = vpack.c.bf16 %v1993_v8, %v1993_v8  ;;  %v1276_v8 = vpack.c.bf16 %v1987_v31, %v1987_v31 }
 0x3d0   :  { %v1278_v24 = vpack.c.bf16 %v1995_v36, %v1995_v36 }
 0x3d1   :  { %v1226_v36 = vunpack.c.l.bf16 %v1154_v30  ;;  %v1284_v45 = vunpack.c.l.bf16 %v1276_v8 }
 0x3d2   :  { %v1286_v22 = vunpack.c.l.bf16 %v1278_v24  ;;  %v46_v24 = vld [vmem:[%s2038_s3] sm:$0x1]  ;;  %s1662_s3 = smov [#allocation5]  }
 0x3d3   :  { %v1242_v29 = vadd.f32 %v1234_v53, %v1226_v36  ;;  %s1410_s28 = sshll.u32 %s1662_s3, 4  ;;  %s1411_s28 = int_to_ptr.vmem [resolvable:$true] %s1410_s28 }
 0x3d5   :  { %v1266_v1 = vmax.f32 %v1242_v29, 0.0 }
 0x3d6   :  { %v1112_v23 = vpop.f32.mrf.mxu0 }
 0x3d7   :  { %v1141_v40 = vpop.f32.mrf.mxu1  ;;  %v1155_v15 = vpack.c.bf16 %v1112_v23, %v1112_v23 }
 0x3d8   :  { %v1279_v16 = vpack.c.bf16 %v1141_v40, %v1141_v40 }
 0x3d9   :  { %v1227_v48 = vunpack.c.l.bf16 %v1155_v15  ;;  %v1239_v15 = vadd.f32 %v1231_v7, %v1223_v51 }
 0x3da   :  { %v1287_v27 = vunpack.c.l.bf16 %v1279_v16  ;;  %v1291_v16 = vadd.f32 %v1283_v54, %v1231_v7 }
 0x3db   :  { %v1243_v42 = vadd.f32 %v1235_v63, %v1227_v48  ;;  %v1263_v59 = vmax.f32 %v1239_v15, 0.0 }
 0x3dc   :  { %v1295_v34 = vadd.f32 %v1287_v27, %v1235_v63  ;;  %v1240_v63 = vadd.f32 %v1232_v4, %v1224_v21  ;;  %v1315_v17 = vmax.f32 %v1291_v16, 0.0 }
 0x3de   :  { %v1114_v35 = vpop.f32.mrf.mxu0  ;;  %v1319_v38 = vmax.f32 %v1295_v34, 0.0  ;;  %v1264_v55 = vmax.f32 %v1240_v63, 0.0 }
 0x3df   :  { %v1143_v12 = vpop.f32.mrf.mxu1  ;;  %v1156_v56 = vpack.c.bf16 %v1114_v35, %v1114_v35 }
 0x3e0   :  { %v1280_v61 = vpack.c.bf16 %v1143_v12, %v1143_v12  ;;  %v1271_v30 = vpack.c.bf16 %v1264_v55, %v1263_v59 }
 0x3e1   :  { %v1228_v32 = vunpack.c.l.bf16 %v1156_v56 }
 0x3e2   :  { %v1288_v18 = vunpack.c.l.bf16 %v1280_v61 }
 0x3e3   :  { %v1244_v39 = vadd.f32 %v1236_v57, %v1228_v32 }
 0x3e4   :  { %v1296_v23 = vadd.f32 %v1288_v18, %v1236_v57  ;;  %v1265_v57 = vmax.f32 %v1241_v46, 0.0 }
 0x3e6   :  { %v1117_v49 = vpop.f32.mrf.mxu0  ;;  %v1320_v31 = vmax.f32 %v1296_v23, 0.0 }
 0x3e7   :  { %v1146_v10 = vpop.f32.mrf.mxu1  ;;  %v1157_v0 = vpack.c.bf16 %v1117_v49, %v1117_v49  ;;  %v1294_v49 = vadd.f32 %v1286_v22, %v1234_v53 }
 0x3e8   :  { %v1281_v62 = vpack.c.bf16 %v1146_v10, %v1146_v10  ;;  %v1268_v10 = vmax.f32 %v1244_v39, 0.0 }
 0x3e9   :  { %v1229_v5 = vunpack.c.l.bf16 %v1157_v0  ;;  %v1293_v0 = vadd.f32 %v1285_v33, %v1233_v60  ;;  %v1318_v56 = vmax.f32 %v1294_v49, 0.0 }
 0x3ea   :  { %v1289_v3 = vunpack.c.l.bf16 %v1281_v62  ;;  %v1267_v62 = vmax.f32 %v1243_v42, 0.0 }
 0x3eb   :  { %v1245_v2 = vadd.f32 %v1237_v37, %v1229_v5  ;;  %v1317_v53 = vmax.f32 %v1293_v0, 0.0 }
 0x3ec   :  { %v1297_v11 = vadd.f32 %v1289_v3, %v1237_v37  ;;  %v1273_v61 = vpack.c.bf16 %v1268_v10, %v1267_v62  ;;  %v1325_v37 = vpack.c.bf16 %v1320_v31, %v1319_v38  ;;  %v1272_v3 = vpack.c.bf16 %v1266_v1, %v1265_v57 }
 0x3ed   :  { %v1269_v35 = vmax.f32 %v1245_v2, 0.0  ;;  %v1324_v60 = vpack.c.bf16 %v1318_v56, %v1317_v53 }
 0x3ee   :  { %v1119_v13 = vpop.f32.mrf.mxu0  ;;  %v1321_v12 = vmax.f32 %v1297_v11, 0.0 }
 0x3ef   :  { %v1148_v6 = vpop.f32.mrf.mxu1  ;;  %v1158_v19 = vpack.c.bf16 %v1119_v13, %v1119_v13  ;;  %v1330_v13 = vpop.permute.xlu2 %1329 }
 0x3f0   :  { %v1282_v25 = vpack.c.bf16 %v1148_v6, %v1148_v6 }
 0x3f1   :  { %v1230_v26 = vunpack.c.l.bf16 %v1158_v19 }
 0x3f2   :  { %v1290_v28 = vunpack.c.l.bf16 %v1282_v25 }
 0x3f3   :  { %v1246_v9 = vadd.f32 %v1238_v58, %v1230_v26 }
 0x3f4   :  { %v1298_v40 = vadd.f32 %v1290_v28, %v1238_v58  ;;  %v1292_v58 = vadd.f32 %v1284_v45, %v1232_v4 }
 0x3f5   :  { %v1270_v43 = vmax.f32 %v1246_v9, 0.0  ;;  %v1367_v9 = vlaneseq }
 0x3f6   :  { %v1322_v44 = vmax.f32 %v1298_v40, 0.0  ;;  %v1316_v5 = vmax.f32 %v1292_v58, 0.0 }
 0x3f7   :  { %v1274_v47 = vpack.c.bf16 %v1270_v43, %v1269_v35  ;;  %vm1369_vm7 = vcmp.lt.s32.totalorder %v1367_v9, 128 }
 0x3f8   :  { %v1326_v50 = vpack.c.bf16 %v1322_v44, %v1321_v12  ;;  %v1323_v4 = vpack.c.bf16 %v1316_v5, %v1315_v17 }
 0x3f9   :  { %1339 = vmatpush.bf16.msrb.mxu2 %v1274_v47 }
 0x3fa   :  { %1376 = vmatpush.bf16.msrb.mxu3 %v1326_v50 }
 0x3fd   :  { %1340 = vmatpush.bf16.msrb.mxu2 %v1273_v61 }
 0x3fe   :  { %1377 = vmatpush.bf16.msrb.mxu3 %v1325_v37 }
 0x401   :  { %1341 = vmatpush.bf16.msrb.mxu2 %v1272_v3 }
 0x402   :  { %1378 = vmatpush.bf16.msrb.mxu3 %v1324_v60 }
 0x405   :  { %1342 = vmatpush.bf16.msrb.mxu2 %v1271_v30 }
 0x406   :  { %1379 = vmatpush.bf16.msrb.mxu3 %v1323_v4 }
 0x408   :  { %1542 = vmatmul.msk.bf16.vlgmr.msrb.gmra.mxu2 %vm247_vm2, %v46_v24 }
 0x409   :  { %1544 = vmatmul.msk.bf16.vlgmr.msrb.gmra.mxu3 %vm247_vm2, %v46_v24 }
 0x48b   :  { %v1344_v6 = vpop.f32.mrf.mxu2 }
 0x48c   :  { %v1381_v32 = vpop.f32.mrf.mxu3  ;;  %v1345_v18 = vadd.f32 %v1344_v6, %v1330_v13 }
 0x48d   :  { %v1382_v19 = vadd.f32 %v1381_v32, %v1330_v13 }
 0x48e   :  { %v1543_v25 = vmul.f32 -1.442695, %v1345_v18 }
 0x48f   :  { %v1545_v14 = vmul.f32 -1.442695, %v1382_v19 }
 0x490   :  { %1592 = vpow2.f32 %v1543_v25 }
 0x491   :  { %1594 = vpow2.f32 %v1545_v14 }
 0x493   :  { %v1346_v52 = vpop.f32.mrf.mxu2 }
 0x494   :  { %v1383_v48 = vpop.f32.mrf.mxu3 }
 0x496   :  { %v1593_v27 = vpop.eup %1592 }
 0x497   :  { %v1595_v2 = vpop.eup %1594  ;;  %v1351_v11 = vadd.f32 1.0, %v1593_v27 }
 0x498   :  { %v1388_v26 = vadd.f32 1.0, %v1595_v2 }
 0x499   :  { %1596 = vrcp.f32 %v1351_v11  ;;  %v1363_v23 = vand.u32 2147483648, %v1351_v11  ;;  %v1361_v41 = vand.u32 2147483647, %v1351_v11  ;;  %vm1357_vm5 = vweird.f32 %v1351_v11 }
 0x49a   :  { %1598 = vrcp.f32 %v1388_v26  ;;  %v1400_v33 = vand.u32 2147483648, %v1388_v26  ;;  %v1398_v34 = vand.u32 2147483647, %v1388_v26  ;;  %vm1394_vm8 = vweird.f32 %v1388_v26 }
 0x49b   :  { %v1364_v12 = vor.u32 1.1754944e-38, %v1363_v23  ;;  %vm1362_vm9 = vcmp.eq.f32.partialorder %v1361_v41, 8.507059e+37 }
 0x49c   :  { %v1401_v21 = vor.u32 1.1754944e-38, %v1400_v33  ;;  %vm1399_vm11 = vcmp.eq.f32.partialorder %v1398_v34, 8.507059e+37 }
 0x49f   :  { %v1597_v28 = vpop.eup %1596 }
 0x4a0   :  { %v1599_v20 = vpop.eup %1598  ;;  %v1353_v8 = vmul.f32 %v1597_v28, %v1351_v11  ;;  %vm1358_vm3 = vweird.f32 %v1597_v28 }
 0x4a1   :  { %v1390_v36 = vmul.f32 %v1599_v20, %v1388_v26  ;;  %vm1395_vm4 = vweird.f32 %v1599_v20  ;;  %vm1359_vm6 = vmor %vm1357_vm5, %vm1358_vm3 }
 0x4a2   :  { %v1354_v22 = vsub.f32 1.0, %v1353_v8  ;;  %vm1396_vm10 = vmor %vm1394_vm8, %vm1395_vm4 }
 0x4a3   :  { %v1391_v39 = vsub.f32 1.0, %v1390_v36 }
 0x4a4   :  { %v1355_v40 = vmul.f32 %v1597_v28, %v1354_v22 }
 0x4a5   :  { %v1392_v42 = vmul.f32 %v1599_v20, %v1391_v39 }
 0x4a6   :  { %v1356_v35 = vadd.f32 %v1597_v28, %v1355_v40 }
 0x4a7   :  { %v1393_v43 = vadd.f32 %v1599_v20, %v1392_v42 }
 0x4a8   :  { %v1360_v44 = vsel %vm1359_vm6, %v1597_v28, %v1356_v35 }
 0x4a9   :  { %v1365_v45 = vsel %vm1362_vm9, %v1364_v12, %v1360_v44  ;;  %v1397_v29 = vsel %vm1396_vm10, %v1599_v20, %v1393_v43 }
 0x4aa   :  { %1371 = vst.msk [vmem:[#allocation5] sm:$0x1] %vm1369_vm7, %v1365_v45  ;;  %v1402_v49 = vsel %vm1399_vm11, %v1401_v21, %v1397_v29 }
 0x4ab   :  { %1404 = vst.msk [vmem:[#allocation5 + $0x1] sm:$0x1] %vm1369_vm7, %v1402_v49 }
 0x4ac   :  { %1415 = dma.vmem_to_hbm [thread:$0]  %s1411_s28, 32, %s1413_s30, [#allocation4]  }
 0x4ad   :  { %1651 = dma.done.wait [#allocation4], 32  }
 0x4ae   :  { %1652 = vsyncadd [#allocation4], 4294967264 }
 0x4af   :  { %1420 = vsyncpa [#allocation3], 1 }
 0x4b0   :  { %1421 = vsyncpa [#allocation4], 1 }

</bundles_post_ra>
